<compile_context>
chip_gen: v7x
topology: tpu7x:2x2x1
jax: 0.10.0
libtpu: 0.0.40
codegen_flags: <defaults>
</compile_context>

<pallas_src>
import numpy as np
import jax
import jax.numpy as jnp
from jax.experimental import pallas as pl
from jax.experimental.pallas import tpu as pltpu


def _round_up(n, k):
    return ((n + k - 1) // k) * k


def _choose_tiles(B, O_pad, m_pad, max_tm=512, acc_budget_elems=16384):
    """Pick (TM, TO).

    TM : mode-tile width, a multiple of 128 dividing m_pad.  Prefer >= 2 mode
         tiles (v7x megacore sharding + real double-buffered pipelining).
    TO : output-channel tile, a multiple of 8 dividing O_pad, chosen so the two
         f32 accumulators (2 * B * TO * TM elems = 8*B*TO*TM bytes) stay
         ~within the vreg file (<= ~128 KiB) instead of spilling to VMEM.
    """
    tm_cands = [t for t in range(128, min(max_tm, m_pad) + 1, 128)
                if m_pad % t == 0]
    if not tm_cands:
        tm_cands = [m_pad]
    pref = [t for t in tm_cands if m_pad // t >= 2] or tm_cands
    fitting = [t for t in pref if B * 8 * t <= acc_budget_elems]
    tm = max(fitting) if fitting else min(pref)

    to_cands = [t for t in range(8, O_pad + 1, 8)
                if O_pad % t == 0 and B * t * tm <= acc_budget_elems]
    to = max(to_cands) if to_cands else 8           # O_pad is a multiple of 8
    return tm, to


# ----------------------------------------------------------------------------
# Pallas kernel: complex, mode-wise channel contraction on one (mode, o) tile.
#   out[b, o, m] = sum_i x[b, i, m] * w[i, o, m]        (complex arithmetic)
#
# Schoolbook form (2 weight slabs, 4 mul + 4 add per (i, o, m)):
#   out_r += xr*wr - xi*wi
#   out_i += xr*wi + xi*wr
#
# Per grid step:
#   xr/xi : (B, Cin, TM)    wr/wi : (Cin, TO, TM)    or/oi : (B, TO, TM)
# ----------------------------------------------------------------------------
def spectral_mul_kernel(xr_ref, xi_ref, wr_ref, wi_ref, or_ref, oi_ref):
    B, Cin, TM = xr_ref.shape
    TO = wr_ref.shape[1]

    acc_r = jnp.zeros((B, TO, TM), jnp.float32)
    acc_i = jnp.zeros((B, TO, TM), jnp.float32)
    # Cin is small and static -> full unroll.  Per-i loads come straight from
    # the refs inside the loop (small live ranges, no (Cin,TO,TM) block held).
    for i in range(Cin):
        xr_i = xr_ref[:, pl.ds(i, 1), :]          # (B, 1, TM)
        xi_i = xi_ref[:, pl.ds(i, 1), :]
        wr_i = wr_ref[i][None]                    # (1, TO, TM)
        wi_i = wi_ref[i][None]
        acc_r = acc_r + (xr_i * wr_i - xi_i * wi_i)
        acc_i = acc_i + (xr_i * wi_i + xi_i * wr_i)

    or_ref[...] = acc_r
    oi_ref[...] = acc_i


def spectral_mul(xr, xi, wr, wi, cout, m_total):
    """All inputs already lane/mode padded.

    xr, xi : (B, Cin, M_pad) float32     (real / imag of x_ft corner blocks)
    wr, wi : (Cin, O_pad, M_pad) float32 (real / imag weight slabs)
    Returns complex64 (B, cout, m_total).
    """
    B, Cin, M_pad = xr.shape
    O_pad = wr.shape[1]
    TM, TO = _choose_tiles(B, O_pad, M_pad)
    assert M_pad % TM == 0 and O_pad % TO == 0
    # mode axis outer, o-tile inner -> x block index constant across inner
    # steps, so Pallas skips re-fetching the x tile.
    grid = (M_pad // TM, O_pad // TO)

    x_spec = pl.BlockSpec((B, Cin, TM), lambda jm, jo: (0, 0, jm))
    w_spec = pl.BlockSpec((Cin, TO, TM), lambda jm, jo: (0, jo, jm))
    o_spec = pl.BlockSpec((B, TO, TM), lambda jm, jo: (0, jo, jm))

    # VMEM limit from the actual per-step footprint (x + w + out tiles), with
    # headroom for the double-buffered pipeline.
    step_bytes = 4 * (2 * B * Cin * TM + 2 * Cin * TO * TM + 2 * B * TO * TM)
    vmem_limit = int(min(max(3 * step_bytes, 16 * 1024 * 1024),
                         64 * 1024 * 1024))

    cost = pl.CostEstimate(
        flops=8 * B * Cin * O_pad * M_pad,
        transcendentals=0,
        bytes_accessed=4 * (2 * B * Cin * M_pad
                            + 2 * Cin * O_pad * M_pad
                            + 2 * B * O_pad * M_pad),
    )

    out_r, out_i = pl.pallas_call(
        spectral_mul_kernel,
        out_shape=(
            jax.ShapeDtypeStruct((B, O_pad, M_pad), jnp.float32),
            jax.ShapeDtypeStruct((B, O_pad, M_pad), jnp.float32),
        ),
        grid_spec=pltpu.PrefetchScalarGridSpec(
            num_scalar_prefetch=0,
            grid=grid,
            in_specs=[x_spec, x_spec, w_spec, w_spec],
            out_specs=[o_spec, o_spec],
        ),
        compiler_params=pltpu.CompilerParams(
            dimension_semantics=("parallel", "parallel"),
            vmem_limit_bytes=vmem_limit,
        ),
        cost_estimate=cost,
    )(xr, xi, wr, wi)

    out_r = out_r[:, :cout, :m_total]
    out_i = out_i[:, :cout, :m_total]
    return out_r + 1j * out_i


# ----------------------------------------------------------------------------
# Weight preprocessing — hoisted out of the forward path (weights are params).
# ----------------------------------------------------------------------------
def prepare_weights(weights):
    """Split real/imag, flatten the 4 corner blocks along one lane-dense mode
    axis, pad out-channels to a multiple of 8 (sublanes) and the mode axis to
    a multiple of 128 (lanes).  In-channels stay unpadded: the blocks cover
    that axis fully and the kernel loops over the true Cin.  Fine for
    inference; fold into the jitted forward if the weights are trained."""
    cin, cout, m1, m2, m3 = weights[0].shape
    M = m1 * m2 * m3
    m_total = 4 * M

    w = jnp.concatenate([wk.reshape(cin, cout, M) for wk in weights], axis=-1)
    wr = jnp.real(w).astype(jnp.float32)
    wi = jnp.imag(w).astype(jnp.float32)

    cout_pad = _round_up(cout, 8)
    m_pad = _round_up(m_total, 128)
    pad_cfg = ((0, 0), (0, cout_pad - cout), (0, m_pad - m_total))
    # TODO(synk): optionally store wr/wi in bf16 to halve weight HBM traffic
    # (requires a looser numerics tolerance than the f32 reference check).
    return {
        "wr": jnp.pad(wr, pad_cfg), "wi": jnp.pad(wi, pad_cfg),
        "cin": cin, "cout": cout, "modes": (m1, m2, m3),
        "m_total": m_total, "m_pad": m_pad,
    }


# ----------------------------------------------------------------------------
# SpectralConv3d forward (FFT glue in plain JAX, hot path in Pallas).
# ----------------------------------------------------------------------------
def spectral_conv3d(x, prep):
    """x: real float32 (B, Cin, D1, D2, D3); prep from prepare_weights."""
    B, Cin, D1, D2, D3 = x.shape
    m1, m2, m3 = prep["modes"]
    cout = prep["cout"]
    M = m1 * m2 * m3
    assert Cin == prep["cin"]
    # Same silent assumption as the PyTorch module; make it explicit.
    assert 2 * m1 <= D1 and 2 * m2 <= D2 and m3 <= D3 // 2 + 1, \
        "retained-mode corner blocks would overlap"

    x_ft = jnp.fft.rfftn(x, axes=(-3, -2, -1))      # (B, Cin, D1, D2, D3//2+1)

    # TODO(synk): fold the 4-corner gather / real-imag split / output scatter
    # into the pallas_call (corner grid axis + scalar-prefetched corner
    # offsets) to drop these extra HBM passes over the corner data.
    corners = [
        x_ft[:, :, :m1, :m2, :m3],
        x_ft[:, :, -m1:, :m2, :m3],
        x_ft[:, :, :m1, -m2:, :m3],
        x_ft[:, :, -m1:, -m2:, :m3],
    ]
    x_blocks = jnp.concatenate(
        [c.reshape(B, Cin, M) for c in corners], axis=-1)       # (B, Cin, 4*M)

    pad_cfg = ((0, 0), (0, 0), (0, prep["m_pad"] - prep["m_total"]))
    xr = jnp.pad(jnp.real(x_blocks).astype(jnp.float32), pad_cfg)
    xi = jnp.pad(jnp.imag(x_blocks).astype(jnp.float32), pad_cfg)

    out_blocks = spectral_mul(xr, xi, prep["wr"], prep["wi"],
                              cout, prep["m_total"])            # (B,Cout,4M) c64

    out_ft = jnp.zeros((B, cout, D1, D2, D3 // 2 + 1), dtype=jnp.complex64)
    blocks = [out_blocks[:, :, k * M:(k + 1) * M].reshape(B, cout, m1, m2, m3)
              for k in range(4)]
    out_ft = out_ft.at[:, :, :m1, :m2, :m3].set(blocks[0])
    out_ft = out_ft.at[:, :, -m1:, :m2, :m3].set(blocks[1])
    out_ft = out_ft.at[:, :, :m1, -m2:, :m3].set(blocks[2])
    out_ft = out_ft.at[:, :, -m1:, -m2:, :m3].set(blocks[3])

    return jnp.fft.irfftn(out_ft, s=(D1, D2, D3), axes=(-3, -2, -1))


# ----------------------------------------------------------------------------
# Parameter init matching nn.Module.__init__ (scale * uniform[0,1) complex).
# ----------------------------------------------------------------------------
def init_weights(key, in_channels, out_channels, m1, m2, m3):
    scale = 1.0 / (in_channels * out_channels)
    ws = []
    for k in jax.random.split(key, 4):
        kr, ki = jax.random.split(k)
        shape = (in_channels, out_channels, m1, m2, m3)
        wr = jax.random.uniform(kr, shape, dtype=jnp.float32)
        wi = jax.random.uniform(ki, shape, dtype=jnp.float32)
        ws.append(scale * (wr + 1j * wi).astype(jnp.complex64))
    return tuple(ws)


# Pure-JAX reference of the full forward (complex einsum instead of Pallas).
def reference(x, weights, cout, m1, m2, m3):
    B = x.shape[0]
    D1, D2, D3 = x.shape[-3:]
    x_ft = jnp.fft.rfftn(x, axes=(-3, -2, -1))
    out_ft = jnp.zeros((B, cout, D1, D2, D3 // 2 + 1), dtype=jnp.complex64)
    mul = lambda a, w: jnp.einsum('bixyz,ioxyz->boxyz', a, w)
    out_ft = out_ft.at[:, :, :m1, :m2, :m3].set(
        mul(x_ft[:, :, :m1, :m2, :m3], weights[0]))
    out_ft = out_ft.at[:, :, -m1:, :m2, :m3].set(
        mul(x_ft[:, :, -m1:, :m2, :m3], weights[1]))
    out_ft = out_ft.at[:, :, :m1, -m2:, :m3].set(
        mul(x_ft[:, :, :m1, -m2:, :m3], weights[2]))
    out_ft = out_ft.at[:, :, -m1:, -m2:, :m3].set(
        mul(x_ft[:, :, -m1:, -m2:, :m3], weights[3]))
    return jnp.fft.irfftn(out_ft, s=(D1, D2, D3), axes=(-3, -2, -1))


if __name__ == "__main__":
    B, Cin, Cout = 2, 4, 4
    D1 = D2 = D3 = 16
    m1 = m2 = m3 = 4

    key = jax.random.PRNGKey(0)
    kx, kw = jax.random.split(key)
    x = jax.random.normal(kx, (B, Cin, D1, D2, D3), dtype=jnp.float32)
    weights = init_weights(kw, Cin, Cout, m1, m2, m3)

    prep = prepare_weights(weights)          # hoisted weight layout work
    fwd = jax.jit(lambda xx: spectral_conv3d(xx, prep))

    out = jax.block_until_ready(fwd(x))
    assert out.shape == (B, Cout, D1, D2, D3), out.shape

    ref = jax.block_until_ready(reference(x, weights, Cout, m1, m2, m3))
    np.testing.assert_allclose(np.asarray(out), np.asarray(ref),
                               rtol=1e-4, atol=2e-5)
    print("KERNEL_OK")
</pallas_src>

<mosaic_0001>
module attributes {stable_mosaic.version = 11 : i64} {
  func.func @spectral_mul_kernel(%arg0: i32, %arg1: i32, %arg2: memref<2x4x128xf32, #tpu.memory_space<vmem>>, %arg3: memref<2x4x128xf32, #tpu.memory_space<vmem>>, %arg4: memref<4x8x128xf32, #tpu.memory_space<vmem>>, %arg5: memref<4x8x128xf32, #tpu.memory_space<vmem>>, %arg6: memref<2x8x128xf32, #tpu.memory_space<vmem>>, %arg7: memref<2x8x128xf32, #tpu.memory_space<vmem>>) attributes {dimension_semantics = [#tpu.dimension_semantics<parallel>, #tpu.dimension_semantics<parallel>], iteration_bounds = array<i64: 2, 1>, scalar_prefetch = 0 : i64, scratch_operands = 0 : i64, tpu.core_type = #tpu.core_type<tc>, window_params = [{transform_indices = @transform_0, window_bounds = array<i64: 2, 4, 128>}, {transform_indices = @transform_1, window_bounds = array<i64: 2, 4, 128>}, {transform_indices = @transform_2, window_bounds = array<i64: 4, 8, 128>}, {transform_indices = @transform_3, window_bounds = array<i64: 4, 8, 128>}, {transform_indices = @transform_4, window_bounds = array<i64: 2, 8, 128>}, {transform_indices = @transform_5, window_bounds = array<i64: 2, 8, 128>}]} {
    %cst = arith.constant 0.000000e+00 : f32
    %0 = vector.broadcast %cst : f32 to vector<2x8x128xf32>
    %cst_0 = arith.constant 0.000000e+00 : f32
    %1 = vector.broadcast %cst_0 : f32 to vector<2x8x128xf32>
    %c0 = arith.constant 0 : index
    %c0_1 = arith.constant 0 : index
    %c0_2 = arith.constant 0 : index
    %2 = vector.load %arg2[%c0, %c0_1, %c0_2] : memref<2x4x128xf32, #tpu.memory_space<vmem>>, vector<2x1x128xf32>
    %c0_3 = arith.constant 0 : index
    %c0_4 = arith.constant 0 : index
    %c0_5 = arith.constant 0 : index
    %3 = vector.load %arg3[%c0_3, %c0_4, %c0_5] : memref<2x4x128xf32, #tpu.memory_space<vmem>>, vector<2x1x128xf32>
    %c0_6 = arith.constant 0 : index
    %c0_7 = arith.constant 0 : index
    %c0_8 = arith.constant 0 : index
    %4 = vector.load %arg4[%c0_6, %c0_7, %c0_8] : memref<4x8x128xf32, #tpu.memory_space<vmem>>, vector<1x8x128xf32>
    %5 = vector.shape_cast %4 : vector<1x8x128xf32> to vector<8x128xf32>
    %6 = vector.shape_cast %5 : vector<8x128xf32> to vector<1x8x128xf32>
    %c0_9 = arith.constant 0 : index
    %c0_10 = arith.constant 0 : index
    %c0_11 = arith.constant 0 : index
    %7 = vector.load %arg5[%c0_9, %c0_10, %c0_11] : memref<4x8x128xf32, #tpu.memory_space<vmem>>, vector<1x8x128xf32>
    %8 = vector.shape_cast %7 : vector<1x8x128xf32> to vector<8x128xf32>
    %9 = vector.shape_cast %8 : vector<8x128xf32> to vector<1x8x128xf32>
    %10 = vector.broadcast %2 : vector<2x1x128xf32> to vector<2x8x128xf32>
    %11 = vector.broadcast %6 : vector<1x8x128xf32> to vector<2x8x128xf32>
    %12 = arith.mulf %10, %11 : vector<2x8x128xf32>
    %13 = vector.broadcast %3 : vector<2x1x128xf32> to vector<2x8x128xf32>
    %14 = vector.broadcast %9 : vector<1x8x128xf32> to vector<2x8x128xf32>
    %15 = arith.mulf %13, %14 : vector<2x8x128xf32>
    %16 = arith.subf %12, %15 : vector<2x8x128xf32>
    %17 = arith.addf %0, %16 : vector<2x8x128xf32>
    %18 = vector.broadcast %2 : vector<2x1x128xf32> to vector<2x8x128xf32>
    %19 = vector.broadcast %9 : vector<1x8x128xf32> to vector<2x8x128xf32>
    %20 = arith.mulf %18, %19 : vector<2x8x128xf32>
    %21 = vector.broadcast %3 : vector<2x1x128xf32> to vector<2x8x128xf32>
    %22 = vector.broadcast %6 : vector<1x8x128xf32> to vector<2x8x128xf32>
    %23 = arith.mulf %21, %22 : vector<2x8x128xf32>
    %24 = arith.addf %20, %23 : vector<2x8x128xf32>
    %25 = arith.addf %1, %24 : vector<2x8x128xf32>
    %c0_12 = arith.constant 0 : index
    %c1 = arith.constant 1 : index
    %c0_13 = arith.constant 0 : index
    %26 = vector.load %arg2[%c0_12, %c1, %c0_13] : memref<2x4x128xf32, #tpu.memory_space<vmem>>, vector<2x1x128xf32>
    %c0_14 = arith.constant 0 : index
    %c1_15 = arith.constant 1 : index
    %c0_16 = arith.constant 0 : index
    %27 = vector.load %arg3[%c0_14, %c1_15, %c0_16] : memref<2x4x128xf32, #tpu.memory_space<vmem>>, vector<2x1x128xf32>
    %c1_17 = arith.constant 1 : index
    %c0_18 = arith.constant 0 : index
    %c0_19 = arith.constant 0 : index
    %28 = vector.load %arg4[%c1_17, %c0_18, %c0_19] : memref<4x8x128xf32, #tpu.memory_space<vmem>>, vector<1x8x128xf32>
    %29 = vector.shape_cast %28 : vector<1x8x128xf32> to vector<8x128xf32>
    %30 = vector.shape_cast %29 : vector<8x128xf32> to vector<1x8x128xf32>
    %c1_20 = arith.constant 1 : index
    %c0_21 = arith.constant 0 : index
    %c0_22 = arith.constant 0 : index
    %31 = vector.load %arg5[%c1_20, %c0_21, %c0_22] : memref<4x8x128xf32, #tpu.memory_space<vmem>>, vector<1x8x128xf32>
    %32 = vector.shape_cast %31 : vector<1x8x128xf32> to vector<8x128xf32>
    %33 = vector.shape_cast %32 : vector<8x128xf32> to vector<1x8x128xf32>
    %34 = vector.broadcast %26 : vector<2x1x128xf32> to vector<2x8x128xf32>
    %35 = vector.broadcast %30 : vector<1x8x128xf32> to vector<2x8x128xf32>
    %36 = arith.mulf %34, %35 : vector<2x8x128xf32>
    %37 = vector.broadcast %27 : vector<2x1x128xf32> to vector<2x8x128xf32>
    %38 = vector.broadcast %33 : vector<1x8x128xf32> to vector<2x8x128xf32>
    %39 = arith.mulf %37, %38 : vector<2x8x128xf32>
    %40 = arith.subf %36, %39 : vector<2x8x128xf32>
    %41 = arith.addf %17, %40 : vector<2x8x128xf32>
    %42 = vector.broadcast %26 : vector<2x1x128xf32> to vector<2x8x128xf32>
    %43 = vector.broadcast %33 : vector<1x8x128xf32> to vector<2x8x128xf32>
    %44 = arith.mulf %42, %43 : vector<2x8x128xf32>
    %45 = vector.broadcast %27 : vector<2x1x128xf32> to vector<2x8x128xf32>
    %46 = vector.broadcast %30 : vector<1x8x128xf32> to vector<2x8x128xf32>
    %47 = arith.mulf %45, %46 : vector<2x8x128xf32>
    %48 = arith.addf %44, %47 : vector<2x8x128xf32>
    %49 = arith.addf %25, %48 : vector<2x8x128xf32>
    %c0_23 = arith.constant 0 : index
    %c2 = arith.constant 2 : index
    %c0_24 = arith.constant 0 : index
    %50 = vector.load %arg2[%c0_23, %c2, %c0_24] : memref<2x4x128xf32, #tpu.memory_space<vmem>>, vector<2x1x128xf32>
    %c0_25 = arith.constant 0 : index
    %c2_26 = arith.constant 2 : index
    %c0_27 = arith.constant 0 : index
    %51 = vector.load %arg3[%c0_25, %c2_26, %c0_27] : memref<2x4x128xf32, #tpu.memory_space<vmem>>, vector<2x1x128xf32>
    %c2_28 = arith.constant 2 : index
    %c0_29 = arith.constant 0 : index
    %c0_30 = arith.constant 0 : index
    %52 = vector.load %arg4[%c2_28, %c0_29, %c0_30] : memref<4x8x128xf32, #tpu.memory_space<vmem>>, vector<1x8x128xf32>
    %53 = vector.shape_cast %52 : vector<1x8x128xf32> to vector<8x128xf32>
    %54 = vector.shape_cast %53 : vector<8x128xf32> to vector<1x8x128xf32>
    %c2_31 = arith.constant 2 : index
    %c0_32 = arith.constant 0 : index
    %c0_33 = arith.constant 0 : index
    %55 = vector.load %arg5[%c2_31, %c0_32, %c0_33] : memref<4x8x128xf32, #tpu.memory_space<vmem>>, vector<1x8x128xf32>
    %56 = vector.shape_cast %55 : vector<1x8x128xf32> to vector<8x128xf32>
    %57 = vector.shape_cast %56 : vector<8x128xf32> to vector<1x8x128xf32>
    %58 = vector.broadcast %50 : vector<2x1x128xf32> to vector<2x8x128xf32>
    %59 = vector.broadcast %54 : vector<1x8x128xf32> to vector<2x8x128xf32>
    %60 = arith.mulf %58, %59 : vector<2x8x128xf32>
    %61 = vector.broadcast %51 : vector<2x1x128xf32> to vector<2x8x128xf32>
    %62 = vector.broadcast %57 : vector<1x8x128xf32> to vector<2x8x128xf32>
    %63 = arith.mulf %61, %62 : vector<2x8x128xf32>
    %64 = arith.subf %60, %63 : vector<2x8x128xf32>
    %65 = arith.addf %41, %64 : vector<2x8x128xf32>
    %66 = vector.broadcast %50 : vector<2x1x128xf32> to vector<2x8x128xf32>
    %67 = vector.broadcast %57 : vector<1x8x128xf32> to vector<2x8x128xf32>
    %68 = arith.mulf %66, %67 : vector<2x8x128xf32>
    %69 = vector.broadcast %51 : vector<2x1x128xf32> to vector<2x8x128xf32>
    %70 = vector.broadcast %54 : vector<1x8x128xf32> to vector<2x8x128xf32>
    %71 = arith.mulf %69, %70 : vector<2x8x128xf32>
    %72 = arith.addf %68, %71 : vector<2x8x128xf32>
    %73 = arith.addf %49, %72 : vector<2x8x128xf32>
    %c0_34 = arith.constant 0 : index
    %c3 = arith.constant 3 : index
    %c0_35 = arith.constant 0 : index
    %74 = vector.load %arg2[%c0_34, %c3, %c0_35] : memref<2x4x128xf32, #tpu.memory_space<vmem>>, vector<2x1x128xf32>
    %c0_36 = arith.constant 0 : index
    %c3_37 = arith.constant 3 : index
    %c0_38 = arith.constant 0 : index
    %75 = vector.load %arg3[%c0_36, %c3_37, %c0_38] : memref<2x4x128xf32, #tpu.memory_space<vmem>>, vector<2x1x128xf32>
    %c3_39 = arith.constant 3 : index
    %c0_40 = arith.constant 0 : index
    %c0_41 = arith.constant 0 : index
    %76 = vector.load %arg4[%c3_39, %c0_40, %c0_41] : memref<4x8x128xf32, #tpu.memory_space<vmem>>, vector<1x8x128xf32>
    %77 = vector.shape_cast %76 : vector<1x8x128xf32> to vector<8x128xf32>
    %78 = vector.shape_cast %77 : vector<8x128xf32> to vector<1x8x128xf32>
    %c3_42 = arith.constant 3 : index
    %c0_43 = arith.constant 0 : index
    %c0_44 = arith.constant 0 : index
    %79 = vector.load %arg5[%c3_42, %c0_43, %c0_44] : memref<4x8x128xf32, #tpu.memory_space<vmem>>, vector<1x8x128xf32>
    %80 = vector.shape_cast %79 : vector<1x8x128xf32> to vector<8x128xf32>
    %81 = vector.shape_cast %80 : vector<8x128xf32> to vector<1x8x128xf32>
    %82 = vector.broadcast %74 : vector<2x1x128xf32> to vector<2x8x128xf32>
    %83 = vector.broadcast %78 : vector<1x8x128xf32> to vector<2x8x128xf32>
    %84 = arith.mulf %82, %83 : vector<2x8x128xf32>
    %85 = vector.broadcast %75 : vector<2x1x128xf32> to vector<2x8x128xf32>
    %86 = vector.broadcast %81 : vector<1x8x128xf32> to vector<2x8x128xf32>
    %87 = arith.mulf %85, %86 : vector<2x8x128xf32>
    %88 = arith.subf %84, %87 : vector<2x8x128xf32>
    %89 = arith.addf %65, %88 : vector<2x8x128xf32>
    %90 = vector.broadcast %74 : vector<2x1x128xf32> to vector<2x8x128xf32>
    %91 = vector.broadcast %81 : vector<1x8x128xf32> to vector<2x8x128xf32>
    %92 = arith.mulf %90, %91 : vector<2x8x128xf32>
    %93 = vector.broadcast %75 : vector<2x1x128xf32> to vector<2x8x128xf32>
    %94 = vector.broadcast %78 : vector<1x8x128xf32> to vector<2x8x128xf32>
    %95 = arith.mulf %93, %94 : vector<2x8x128xf32>
    %96 = arith.addf %92, %95 : vector<2x8x128xf32>
    %97 = arith.addf %73, %96 : vector<2x8x128xf32>
    %c0_45 = arith.constant 0 : index
    %c0_46 = arith.constant 0 : index
    %c0_47 = arith.constant 0 : index
    %98 = vector.load %arg6[%c0_45, %c0_46, %c0_47] : memref<2x8x128xf32, #tpu.memory_space<vmem>>, vector<2x8x128xf32>
    tpu.vector_store %arg6[%c0_45, %c0_46, %c0_47], %89 {strides = array<i32>} : memref<2x8x128xf32, #tpu.memory_space<vmem>>, vector<2x8x128xf32>,
    %c0_48 = arith.constant 0 : index
    %c0_49 = arith.constant 0 : index
    %c0_50 = arith.constant 0 : index
    %99 = vector.load %arg7[%c0_48, %c0_49, %c0_50] : memref<2x8x128xf32, #tpu.memory_space<vmem>>, vector<2x8x128xf32>
    tpu.vector_store %arg7[%c0_48, %c0_49, %c0_50], %97 {strides = array<i32>} : memref<2x8x128xf32, #tpu.memory_space<vmem>>, vector<2x8x128xf32>,
    return
  }
  func.func @transform_0(%arg0: i32, %arg1: i32) -> (i32, i32, i32) {
    %c0_i32 = arith.constant 0 : i32
    %c0_i32_0 = arith.constant 0 : i32
    %c0_i32_1 = arith.constant 0 : i32
    return %c0_i32, %c0_i32_0, %arg0 : i32, i32, i32
  }
  func.func @transform_1(%arg0: i32, %arg1: i32) -> (i32, i32, i32) {
    %c0_i32 = arith.constant 0 : i32
    %c0_i32_0 = arith.constant 0 : i32
    %c0_i32_1 = arith.constant 0 : i32
    return %c0_i32, %c0_i32_0, %arg0 : i32, i32, i32
  }
  func.func @transform_2(%arg0: i32, %arg1: i32) -> (i32, i32, i32) {
    %c0_i32 = arith.constant 0 : i32
    %c0_i32_0 = arith.constant 0 : i32
    return %c0_i32, %arg1, %arg0 : i32, i32, i32
  }
  func.func @transform_3(%arg0: i32, %arg1: i32) -> (i32, i32, i32) {
    %c0_i32 = arith.constant 0 : i32
    %c0_i32_0 = arith.constant 0 : i32
    return %c0_i32, %arg1, %arg0 : i32, i32, i32
  }
  func.func @transform_4(%arg0: i32, %arg1: i32) -> (i32, i32, i32) {
    %c0_i32 = arith.constant 0 : i32
    %c0_i32_0 = arith.constant 0 : i32
    return %c0_i32, %arg1, %arg0 : i32, i32, i32
  }
  func.func @transform_5(%arg0: i32, %arg1: i32) -> (i32, i32, i32) {
    %c0_i32 = arith.constant 0 : i32
    %c0_i32_0 = arith.constant 0 : i32
    return %c0_i32, %arg1, %arg0 : i32, i32, i32
  }
}

</mosaic_0001>

<bundles_post_ra>
// kernel: _lambda_.1
= control target key start
LH: loop header
LB: loop body
LE: loop exit
PB: predicated region body
PF: predicated region fallthrough
CT: control target
= control target key end

     0   :  { %s1060_s18 = smov 0   ;;  %s1062_s19 = smov 0   ;;  %s1206_s0 = inlined_call_operand.vmem [shape: f32[2,4,256], index: 0, kind: input, shape index: {}]   ;;  %s1207_s1 = inlined_call_operand.vmem [shape: f32[2,4,256], index: 1, kind: input, shape index: {}]   ;;  %s1208_s2 = inlined_call_operand.vmem [shape: f32[4,8,256], index: 2, kind: input, shape index: {}]   ;;  %s1209_s3 = inlined_call_operand.vmem [shape: f32[4,8,256], index: 3, kind: input, shape index: {}]   ;;  %s1210_s4 = inlined_call_operand.vmem [shape: f32[2,8,256], index: 4, kind: output, shape index: {0}]   ;;  %s1211_s5 = inlined_call_operand.vmem [shape: f32[2,8,256], index: 5, kind: output, shape index: {1}]  }
   0x1   :  { %s1064_s20 = smov 0   ;;  %s1066_s21 = smov 0  }
   0x2   :  { %s1068_s22 = smov 0  }
   0x3 LB: > { %s28_s23 = sadd.s32 1, %s1024_s21  ;;  %s903_s24 = sadd.s32 4294967295, %s1028_s22   ;;  %s1028_s22 = sphi %s1068_s22, %s16_s22   ;;  %s1024_s21 = sphi %s1066_s21, %s1217_s21   ;;  %s1020_s20 = sphi %s1064_s20, %s1216_s20   ;;  %s1016_s19 = sphi %s1062_s19, %s1215_s19   ;;  %s1012_s18 = sphi %s1060_s18, %s1214_s18  }
   0x4   : > { %p30_p0 = scmp.ge.s32.totalorder %s28_s23, 2  ;;  %p42_p1 = scmp.ne.s32.totalorder %s1016_s19, %s1012_s18 }
   0x5   : > { %p43_p2 = scmp.eq.s32.totalorder %s1028_s22, 0  ;;  %p156_p4 = scmp.eq.s32.totalorder %s903_s24, 1 }
   0x6   : > { %s1219_s23 = smov (%p30_p0, %s28_s23), 0  ;;  %s35_s27 = sadd.s32 1, %s1016_s19 }
   0x7   : > { %p1092_p3 = por %p43_p2, %p42_p1  ;;  %s32_s26 = ssub.s32 %s1024_s21, %s1219_s23 }
   0x8   : > { %p33_p5 = scmp.eq.s32.totalorder %s32_s26, 0  ;;  %p1099_p6 = por %p156_p4, %p42_p1 }
   0x9   : > { %p906_p7 = scmp.ge.s32.totalorder %s1028_s22, 2 }
   0xa   : > { %s1104_s29 = scalar_select %p33_p5, %s1016_s19, %s35_s27  }
   0xb   : > { %206 = sbr.rel (%p906_p7) target bundleno = 46 (0x2e), region = 16 }
  0x12   : > { %209 = sbr.rel (!%p1092_p3) target bundleno = 25 (0x19), region = 20  ;;  %s211_s30 = sand.u32 (%p1092_p3), 1, %s1016_s19  }
  0x13   : > { %s908_s6 = sshll.u32 (%p1092_p3), %s1024_s21, 2  ;;  %s907_s7 = sshll.u32 (%p1092_p3), %s211_s30, 3 }
  0x14   : > { %s215_s10 = scalar_lea.vmem (%p1092_p3), %s1206_s0, %s908_s6  ;;  %s213_s11 = scalar_lea.vmem (%p1092_p3), [#allocation2], %s907_s7 }
  0x15   : > { %v231_v0 = vld [vmem:[%s215_s10] sm:$0xf] (%p1092_p3)  ;;  %v233_v1 = vld [vmem:[%s215_s10 + $0x8] sm:$0xf] (%p1092_p3) }
  0x16   : > { %232 = vst [vmem:[%s213_s11] sm:$0xf] (%p1092_p3), %v231_v0  ;;  %234 = vst [vmem:[%s213_s11 + $0x4] sm:$0xf] (%p1092_p3), %v233_v1 }
  0x19 PF: > { %261 = sbr.rel (!%p1092_p3) target bundleno = 32 (0x20), region = 61  ;;  %s263_s12 = sand.u32 (%p1092_p3), 1, %s1016_s19  }
  0x1a   : > { %s910_s13 = sshll.u32 (%p1092_p3), %s1024_s21, 2  ;;  %s909_s14 = sshll.u32 (%p1092_p3), %s263_s12, 3 }
  0x1b   : > { %s267_s17 = scalar_lea.vmem (%p1092_p3), %s1207_s1, %s910_s13  ;;  %s265_s24 = scalar_lea.vmem (%p1092_p3), [#allocation3], %s909_s14 }
  0x1c   : > { %v283_v2 = vld [vmem:[%s267_s17] sm:$0xf] (%p1092_p3)  ;;  %v285_v3 = vld [vmem:[%s267_s17 + $0x8] sm:$0xf] (%p1092_p3) }
  0x1d   : > { %284 = vst [vmem:[%s265_s24] sm:$0xf] (%p1092_p3), %v283_v2  ;;  %286 = vst [vmem:[%s265_s24 + $0x4] sm:$0xf] (%p1092_p3), %v285_v3 }
  0x20 PF: > { %313 = sbr.rel (!%p1092_p3) target bundleno = 39 (0x27), region = 102  ;;  %s315_s26 = sand.u32 (%p1092_p3), 1, %s1016_s19  }
  0x21   : > { %s912_s27 = sshll.u32 (%p1092_p3), %s1024_s21, 3  ;;  %s911_s30 = sshll.u32 (%p1092_p3), %s315_s26, 5 }
  0x22   : > { %s321_s8 = scalar_lea.vmem (%p1092_p3), %s1208_s2, %s912_s27  ;;  %s317_s9 = scalar_lea.vmem (%p1092_p3), [#allocation4], %s911_s30 }
  0x23   : > { %v355_v4 = vld [vmem:[%s321_s8] sm:$0xff] (%p1092_p3)  ;;  %v357_v5 = vld [vmem:[%s321_s8 + $0x10] sm:$0xff] (%p1092_p3) }
  0x24   : > { %v359_v6 = vld [vmem:[%s321_s8 + $0x20] sm:$0xff] (%p1092_p3)  ;;  %356 = vst [vmem:[%s317_s9] sm:$0xff] (%p1092_p3), %v355_v4  ;;  %358 = vst [vmem:[%s317_s9 + $0x8] sm:$0xff] (%p1092_p3), %v357_v5  ;;  %v361_v7 = vld [vmem:[%s321_s8 + $0x30] sm:$0xff] (%p1092_p3) }
  0x25   : > { %360 = vst [vmem:[%s317_s9 + $0x10] sm:$0xff] (%p1092_p3), %v359_v6  ;;  %362 = vst [vmem:[%s317_s9 + $0x18] sm:$0xff] (%p1092_p3), %v361_v7 }
  0x27 PF: > { %368 = sbr.rel (!%p1092_p3) target bundleno = 46 (0x2e), region = 140  ;;  %s370_s10 = sand.u32 (%p1092_p3), 1, %s1016_s19  }
  0x28   : > { %s914_s11 = sshll.u32 (%p1092_p3), %s1024_s21, 3  ;;  %s913_s12 = sshll.u32 (%p1092_p3), %s370_s10, 5 }
  0x29   : > { %s376_s15 = scalar_lea.vmem (%p1092_p3), %s1209_s3, %s914_s11  ;;  %s372_s16 = scalar_lea.vmem (%p1092_p3), [#allocation5], %s913_s12 }
  0x2a   : > { %v410_v8 = vld [vmem:[%s376_s15] sm:$0xff] (%p1092_p3)  ;;  %v412_v9 = vld [vmem:[%s376_s15 + $0x10] sm:$0xff] (%p1092_p3) }
  0x2b   : > { %v414_v10 = vld [vmem:[%s376_s15 + $0x20] sm:$0xff] (%p1092_p3)  ;;  %411 = vst [vmem:[%s372_s16] sm:$0xff] (%p1092_p3), %v410_v8  ;;  %413 = vst [vmem:[%s372_s16 + $0x8] sm:$0xff] (%p1092_p3), %v412_v9  ;;  %v416_v11 = vld [vmem:[%s376_s15 + $0x30] sm:$0xff] (%p1092_p3) }
  0x2c   : > { %415 = vst [vmem:[%s372_s16 + $0x10] sm:$0xff] (%p1092_p3), %v414_v10  ;;  %417 = vst [vmem:[%s372_s16 + $0x18] sm:$0xff] (%p1092_p3), %v416_v11 }
  0x2e PF: > { %p915_p8 = scmp.ge.s32.totalorder %s1028_s22, 1  ;;  %p422_p9 = scmp.lt.s32.totalorder %s1028_s22, 3 }
  0x30   : > { %p423_p10 = pnand %p915_p8, %p422_p9 }
  0x31   : > { %s1138_s25 = sand.u32 (!%p423_p10), 1, %s1012_s18  }
  0x32   : > { %426 = sbr.rel (%p423_p10) target bundleno = 87 (0x57), region = 178  ;;  %s916_s17 = sshll.u32 (!%p423_p10), %s1138_s25, 3 }
  0x33   : > { %s918_s24 = sshll.u32 (!%p423_p10), %s1138_s25, 5  ;;  %s1142_s26 = scalar_lea.vmem (!%p423_p10), [#allocation2], %s916_s17 }
  0x34   : > { %v922_v12 = vld [vmem:[%s1142_s26] ss:$0 sm:$0xff] (!%p423_p10)  ;;  %s1145_s27 = scalar_lea.vmem (!%p423_p10), [#allocation3], %s916_s17  ;;  %s445_s30 = scalar_lea.vmem (!%p423_p10), [#allocation4], %s918_s24  ;;  %v928_v16 = vld [vmem:[%s1142_s26 + $0x1] ss:$0 sm:$0xff] (!%p423_p10) }
  0x35   : > { %v924_v13 = vld [vmem:[%s1145_s27] ss:$0 sm:$0xff] (!%p423_p10)  ;;  %v1148_v14 = vld [vmem:[%s445_s30] sm:$0xff] (!%p423_p10)  ;;  %s452_s18 = scalar_lea.vmem (!%p423_p10), [#allocation5], %s918_s24  ;;  %v930_v19 = vld [vmem:[%s1145_s27 + $0x1] ss:$0 sm:$0xff] (!%p423_p10) }
  0x36   : > { %v497_v15 = vld [vmem:[%s452_s18] sm:$0xff] (!%p423_p10)  ;;  %v506_v17 = vmul.f32 (!%p423_p10), %v922_v12, %v1148_v14  ;;  %v1153_v20 = vld [vmem:[%s445_s30 + $0x8] sm:$0xff] (!%p423_p10)  ;;  %v524_v23 = vmul.f32 (!%p423_p10), %v924_v13, %v1148_v14  ;;  %v936_v27 = vld [vmem:[%s1145_s27 + $0x2] ss:$0 sm:$0xff] (!%p423_p10)  ;;  %s920_s6 = sshll.u32 (!%p423_p10), %s1138_s25, 4 }
  0x37   : > { %v516_v18 = vmul.f32 (!%p423_p10), %v924_v13, %v497_v15  ;;  %v927_v21 = vld [vmem:[%s452_s18 + $0x8] sm:$0xff] (!%p423_p10)  ;;  %v522_v22 = vmul.f32 (!%p423_p10), %v922_v12, %v497_v15  ;;  %v546_v24 = vmul.f32 (!%p423_p10), %v928_v16, %v1153_v20  ;;  %v932_v28 = vld [vmem:[%s445_s30 + $0x10] sm:$0xff] (!%p423_p10)  ;;  %v564_v30 = vmul.f32 (!%p423_p10), %v930_v19, %v1153_v20  ;;  %v938_v40 = vld [vmem:[%s445_s30 + $0x18] sm:$0xff] (!%p423_p10)  ;;  %s485_s7 = scalar_lea.vmem (!%p423_p10), [#allocation6], %s920_s6  ;;  %s491_s8 = scalar_lea.vmem (!%p423_p10), [#allocation7], %s920_s6 }
  0x38   : > { %v556_v25 = vmul.f32 (!%p423_p10), %v930_v19, %v927_v21  ;;  %v934_v26 = vld [vmem:[%s1142_s26 + $0x2] ss:$0 sm:$0xff] (!%p423_p10)  ;;  %v562_v29 = vmul.f32 (!%p423_p10), %v928_v16, %v927_v21  ;;  %v933_v32 = vld [vmem:[%s452_s18 + $0x10] sm:$0xff] (!%p423_p10)  ;;  %v940_v34 = vld [vmem:[%s1142_s26 + $0x3] ss:$0 sm:$0xff] (!%p423_p10)  ;;  %v604_v37 = vmul.f32 (!%p423_p10), %v936_v27, %v932_v28 }
  0x39   : > { %v518_v31 = vsub.f32 %v506_v17, %v516_v18  ;;  %v586_v33 = vmul.f32 %v934_v26, %v932_v28  ;;  %v942_v35 = vld [vmem:[%s1145_s27 + $0x3] ss:$0 sm:$0xff]  ;;  %v526_v36 = vadd.f32 %v524_v23, %v522_v22  ;;  %v596_v39 = vmul.f32 %v936_v27, %v933_v32  ;;  %v923_v42 = vld [vmem:[%s1142_s26 + $0x4] ss:$0 sm:$0xff]  ;;  %v925_v47 = vld [vmem:[%s1145_s27 + $0x4] ss:$0 sm:$0xff] }
  0x3a   : > { %v558_v38 = vsub.f32 %v546_v24, %v556_v25  ;;  %v939_v41 = vld [vmem:[%s452_s18 + $0x18] sm:$0xff]  ;;  %v566_v43 = vadd.f32 %v564_v30, %v562_v29  ;;  %v602_v44 = vmul.f32 %v934_v26, %v933_v32  ;;  %v626_v45 = vmul.f32 %v940_v34, %v938_v40  ;;  %v929_v49 = vld [vmem:[%s1142_s26 + $0x5] ss:$0 sm:$0xff]  ;;  %v935_v56 = vld [vmem:[%s1142_s26 + $0x6] ss:$0 sm:$0xff]  ;;  %s946_s9 = sshll.u32 (%p1099_p6), %s1020_s20, 3 }
  0x3b   : > { %v636_v46 = vmul.f32 %v942_v35, %v939_v41  ;;  %v507_v48 = vmul.f32 %v923_v42, %v1148_v14  ;;  %v931_v50 = vld [vmem:[%s1145_s27 + $0x5] ss:$0 sm:$0xff]  ;;  %v642_v51 = vmul.f32 %v940_v34, %v939_v41  ;;  %v598_v53 = vsub.f32 %v586_v33, %v596_v39  ;;  %v937_v57 = vld [vmem:[%s1145_s27 + $0x6] ss:$0 sm:$0xff]  ;;  %v941_v58 = vld [vmem:[%s1142_s26 + $0x7] ss:$0 sm:$0xff]  ;;  %s668_s12 = scalar_lea.vmem (%p1099_p6), %s1210_s4, %s946_s9 }
  0x3c   : > { %v560_v52 = vadd.f32 %v558_v38, %v518_v31  ;;  %v517_v54 = vmul.f32 %v925_v47, %v497_v15  ;;  %v547_v55 = vmul.f32 %v929_v49, %v1153_v20  ;;  %v557_v60 = vmul.f32 %v931_v50, %v927_v21  ;;  %v943_v63 = vld [vmem:[%s1145_s27 + $0x7] ss:$0 sm:$0xff] }
  0x3d   : > { %v638_v59 = vsub.f32 %v626_v45, %v636_v46  ;;  %v587_v61 = vmul.f32 %v935_v56, %v932_v28  ;;  %v597_v62 = vmul.f32 %v937_v57, %v933_v32  ;;  %v627_v2 = vmul.f32 %v941_v58, %v938_v40 }
  0x3e   : > { %v600_v0 = vadd.f32 %v598_v53, %v560_v52  ;;  %v519_v1 = vsub.f32 %v507_v48, %v517_v54  ;;  %v637_v3 = vmul.f32 %v943_v63, %v939_v41  ;;  %v559_v4 = vsub.f32 %v547_v55, %v557_v60 }
  0x3f   : > { %v599_v5 = vsub.f32 %v587_v61, %v597_v62  ;;  %v568_v6 = vadd.f32 %v566_v43, %v526_v36  ;;  %v606_v7 = vadd.f32 %v604_v37, %v602_v44  ;;  %v644_v10 = vmul.f32 %v942_v35, %v938_v40 }
  0x40   : > { %v640_v8 = vadd.f32 %v638_v59, %v600_v0  ;;  %v639_v9 = vsub.f32 %v627_v2, %v637_v3  ;;  %v523_v11 = vmul.f32 %v923_v42, %v497_v15  ;;  %v561_v12 = vadd.f32 %v559_v4, %v519_v1 }
  0x41   : > { %v608_v13 = vadd.f32 %v606_v7, %v568_v6  ;;  %v525_v16 = vmul.f32 %v925_v47, %v1148_v14  ;;  %v563_v17 = vmul.f32 %v929_v49, %v927_v21  ;;  %v646_v18 = vadd.f32 %v644_v10, %v642_v51 }
  0x42   : > { %650 = vst [vmem:[%s485_s7] sm:$0xff] %v640_v8  ;;  %v565_v19 = vmul.f32 %v931_v50, %v1153_v20  ;;  %v603_v22 = vmul.f32 %v935_v56, %v933_v32  ;;  %v605_v23 = vmul.f32 %v937_v57, %v932_v28  ;;  %v601_v24 = vadd.f32 %v599_v5, %v561_v12 }
  0x43   : > { %v527_v25 = vadd.f32 %v525_v16, %v523_v11  ;;  %v643_v26 = vmul.f32 %v941_v58, %v939_v41  ;;  %v645_v27 = vmul.f32 %v943_v63, %v938_v40  ;;  %v648_v29 = vadd.f32 %v646_v18, %v608_v13 }
  0x44   : > { %v567_v15 = vadd.f32 %v565_v19, %v563_v17  ;;  %v607_v30 = vadd.f32 %v605_v23, %v603_v22  ;;  %v641_v31 = vadd.f32 %v639_v9, %v601_v24 }
  0x45   : > { %652 = vst [vmem:[%s491_s8] sm:$0xff] %v648_v29  ;;  %v647_v21 = vadd.f32 %v645_v27, %v643_v26 }
  0x46   : > { %v569_v14 = vadd.f32 %v567_v15, %v527_v25  ;;  %651 = vst [vmem:[%s485_s7 + $0x8] sm:$0xff] %v641_v31  ;;  %664 = sbr.rel (!%p1099_p6) target bundleno = 79 (0x4f), region = 198 }
  0x48   : > { %v609_v33 = vadd.f32 %v607_v30, %v569_v14 }
  0x49   : > { %v698_v20 = vld [vmem:[%s485_s7] sm:$0xff] (%p1099_p6) }
  0x4a   : > { %v649_v34 = vadd.f32 %v647_v21, %v609_v33  ;;  %699 = vst [vmem:[%s668_s12] sm:$0xff] (%p1099_p6), %v698_v20 }
  0x4c   : > { %653 = vst [vmem:[%s491_s8 + $0x8] sm:$0xff] %v649_v34 }
  0x4d   : > { %v700_v28 = vld [vmem:[%s485_s7 + $0x8] sm:$0xff] }
  0x4e   : > { %701 = vst [vmem:[%s668_s12 + $0x10] sm:$0xff] %v700_v28 }
  0x4f PF: > { %707 = sbr.rel (!%p1099_p6) target bundleno = 87 (0x57), region = 236  ;;  %s947_s13 = sshll.u32 (%p1099_p6), %s1020_s20, 3  ;;  %v741_v32 = vld [vmem:[%s491_s8] sm:$0xff] (%p1099_p6) }
  0x50   : > { %s711_s16 = scalar_lea.vmem (%p1099_p6), %s1211_s5, %s947_s13 }
  0x51   : > { %742 = vst [vmem:[%s711_s16] sm:$0xff] (%p1099_p6), %v741_v32 }
  0x55   : > { %v743_v35 = vld [vmem:[%s491_s8 + $0x8] sm:$0xff] (%p1099_p6) }
  0x56   : > { %744 = vst [vmem:[%s711_s16 + $0x10] sm:$0xff] %v743_v35 }
  0x57 PF: > { %s16_s22 = sadd.s32 1, %s1028_s22   ;;  %s1214_s18 = smov %s1016_s19 }
  0x58   : > { %p13_p11 = scmp.ge.s32.totalorder %s16_s22, 4   ;;  %s1215_s19 = smov %s1104_s29 }
  0x59   : > { %s1216_s20 = smov %s1024_s21  ;;  %s1217_s21 = smov %s1219_s23 }
  0x5a   :  { %15 = sbr.rel (!%p13_p11) target bundleno = 3 (0x3), region = 347 }

// kernel: reverse.1
= control target key start
LH: loop header
LB: loop body
LE: loop exit
PB: predicated region body
PF: predicated region fallthrough
CT: control target
= control target key end

     0   :  { %s1352_s0 = inlined_call_operand.vmem [shape: f32[2,4,16,16,7], index: 0, kind: input, shape index: {}]   ;;  %s1353_s1 = inlined_call_operand.vmem [shape: f32[2,4,16,16,7], index: 1, kind: output, shape index: {}]  }
   0x1   :  { %v448_v0 = vld [vmem:[%s1352_s0 + $0x60] sm:$0xff]  ;;  %v451_v2 = vld [vmem:[%s1352_s0 + $0xd0] sm:$0xff]  ;;  %v558_v56 = vld [vmem:[%s1352_s0 + $0x68] sm:$0xff] }
   0x2   :  { %v449_v1 = vld [vmem:[%s1352_s0 + $0x220] sm:$0xff]  ;;  %4 = vst [vmem:[%s1353_s1] sm:$0xff] %v448_v0  ;;  %452 = vst [vmem:[%s1353_s1 + $0x70] sm:$0xff] %v451_v2  ;;  %v453_v3 = vld [vmem:[%s1352_s0 + $0x290] sm:$0xff] }
   0x3   :  { %450 = vst [vmem:[%s1353_s1 + $0x1c0] sm:$0xff] %v449_v1  ;;  %v455_v4 = vld [vmem:[%s1352_s0 + $0x140] sm:$0xff]  ;;  %454 = vst [vmem:[%s1353_s1 + $0x230] sm:$0xff] %v453_v3  ;;  %v459_v6 = vld [vmem:[%s1352_s0 + $0x1b0] sm:$0xff] }
   0x4   :  { %v457_v5 = vld [vmem:[%s1352_s0 + $0x300] sm:$0xff]  ;;  %456 = vst [vmem:[%s1353_s1 + $0xe0] sm:$0xff] %v455_v4  ;;  %v461_v7 = vld [vmem:[%s1352_s0 + $0x370] sm:$0xff]  ;;  %460 = vst [vmem:[%s1353_s1 + $0x150] sm:$0xff] %v459_v6 }
   0x5   :  { %458 = vst [vmem:[%s1353_s1 + $0x2a0] sm:$0xff] %v457_v5  ;;  %v463_v8 = vld [vmem:[%s1352_s0 + $0x50] sm:$0xff]  ;;  %462 = vst [vmem:[%s1353_s1 + $0x310] sm:$0xff] %v461_v7  ;;  %v467_v10 = vld [vmem:[%s1352_s0 + $0xc0] sm:$0xff] }
   0x6   :  { %464 = vst [vmem:[%s1353_s1 + $0x10] sm:$0xff] %v463_v8  ;;  %v465_v9 = vld [vmem:[%s1352_s0 + $0x210] sm:$0xff]  ;;  %v469_v11 = vld [vmem:[%s1352_s0 + $0x280] sm:$0xff]  ;;  %468 = vst [vmem:[%s1353_s1 + $0x80] sm:$0xff] %v467_v10 }
   0x7   :  { %466 = vst [vmem:[%s1353_s1 + $0x1d0] sm:$0xff] %v465_v9  ;;  %470 = vst [vmem:[%s1353_s1 + $0x240] sm:$0xff] %v469_v11  ;;  %v471_v12 = vld [vmem:[%s1352_s0 + $0x130] sm:$0xff]  ;;  %v475_v14 = vld [vmem:[%s1352_s0 + $0x1a0] sm:$0xff] }
   0x8   :  { %v473_v13 = vld [vmem:[%s1352_s0 + $0x2f0] sm:$0xff]  ;;  %472 = vst [vmem:[%s1353_s1 + $0xf0] sm:$0xff] %v471_v12  ;;  %476 = vst [vmem:[%s1353_s1 + $0x160] sm:$0xff] %v475_v14  ;;  %v477_v15 = vld [vmem:[%s1352_s0 + $0x360] sm:$0xff] }
   0x9   :  { %474 = vst [vmem:[%s1353_s1 + $0x2b0] sm:$0xff] %v473_v13  ;;  %v479_v16 = vld [vmem:[%s1352_s0 + $0x40] sm:$0xff]  ;;  %478 = vst [vmem:[%s1353_s1 + $0x320] sm:$0xff] %v477_v15  ;;  %v483_v18 = vld [vmem:[%s1352_s0 + $0xb0] sm:$0xff] }
   0xa   :  { %v481_v17 = vld [vmem:[%s1352_s0 + $0x200] sm:$0xff]  ;;  %480 = vst [vmem:[%s1353_s1 + $0x20] sm:$0xff] %v479_v16  ;;  %v485_v19 = vld [vmem:[%s1352_s0 + $0x270] sm:$0xff]  ;;  %484 = vst [vmem:[%s1353_s1 + $0x90] sm:$0xff] %v483_v18 }
   0xb   :  { %482 = vst [vmem:[%s1353_s1 + $0x1e0] sm:$0xff] %v481_v17  ;;  %v487_v20 = vld [vmem:[%s1352_s0 + $0x120] sm:$0xff]  ;;  %486 = vst [vmem:[%s1353_s1 + $0x250] sm:$0xff] %v485_v19  ;;  %v491_v22 = vld [vmem:[%s1352_s0 + $0x190] sm:$0xff] }
   0xc   :  { %488 = vst [vmem:[%s1353_s1 + $0x100] sm:$0xff] %v487_v20  ;;  %v489_v21 = vld [vmem:[%s1352_s0 + $0x2e0] sm:$0xff]  ;;  %v493_v23 = vld [vmem:[%s1352_s0 + $0x350] sm:$0xff]  ;;  %492 = vst [vmem:[%s1353_s1 + $0x170] sm:$0xff] %v491_v22 }
   0xd   :  { %490 = vst [vmem:[%s1353_s1 + $0x2c0] sm:$0xff] %v489_v21  ;;  %494 = vst [vmem:[%s1353_s1 + $0x330] sm:$0xff] %v493_v23  ;;  %v495_v24 = vld [vmem:[%s1352_s0 + $0x30] sm:$0xff]  ;;  %v499_v26 = vld [vmem:[%s1352_s0 + $0xa0] sm:$0xff] }
   0xe   :  { %v497_v25 = vld [vmem:[%s1352_s0 + $0x1f0] sm:$0xff]  ;;  %496 = vst [vmem:[%s1353_s1 + $0x30] sm:$0xff] %v495_v24  ;;  %500 = vst [vmem:[%s1353_s1 + $0xa0] sm:$0xff] %v499_v26  ;;  %v501_v27 = vld [vmem:[%s1352_s0 + $0x260] sm:$0xff] }
   0xf   :  { %498 = vst [vmem:[%s1353_s1 + $0x1f0] sm:$0xff] %v497_v25  ;;  %v503_v28 = vld [vmem:[%s1352_s0 + $0x110] sm:$0xff]  ;;  %502 = vst [vmem:[%s1353_s1 + $0x260] sm:$0xff] %v501_v27  ;;  %v507_v30 = vld [vmem:[%s1352_s0 + $0x180] sm:$0xff] }
  0x10   :  { %v505_v29 = vld [vmem:[%s1352_s0 + $0x2d0] sm:$0xff]  ;;  %504 = vst [vmem:[%s1353_s1 + $0x110] sm:$0xff] %v503_v28  ;;  %v509_v31 = vld [vmem:[%s1352_s0 + $0x340] sm:$0xff]  ;;  %508 = vst [vmem:[%s1353_s1 + $0x180] sm:$0xff] %v507_v30 }
  0x11   :  { %506 = vst [vmem:[%s1353_s1 + $0x2d0] sm:$0xff] %v505_v29  ;;  %v511_v32 = vld [vmem:[%s1352_s0 + $0x20] sm:$0xff]  ;;  %510 = vst [vmem:[%s1353_s1 + $0x340] sm:$0xff] %v509_v31  ;;  %v515_v34 = vld [vmem:[%s1352_s0 + $0x90] sm:$0xff] }
  0x12   :  { %512 = vst [vmem:[%s1353_s1 + $0x40] sm:$0xff] %v511_v32  ;;  %v513_v33 = vld [vmem:[%s1352_s0 + $0x1e0] sm:$0xff]  ;;  %v517_v35 = vld [vmem:[%s1352_s0 + $0x250] sm:$0xff]  ;;  %516 = vst [vmem:[%s1353_s1 + $0xb0] sm:$0xff] %v515_v34 }
  0x13   :  { %514 = vst [vmem:[%s1353_s1 + $0x200] sm:$0xff] %v513_v33  ;;  %518 = vst [vmem:[%s1353_s1 + $0x270] sm:$0xff] %v517_v35  ;;  %v519_v36 = vld [vmem:[%s1352_s0 + $0x100] sm:$0xff]  ;;  %v523_v38 = vld [vmem:[%s1352_s0 + $0x170] sm:$0xff] }
  0x14   :  { %v521_v37 = vld [vmem:[%s1352_s0 + $0x2c0] sm:$0xff]  ;;  %520 = vst [vmem:[%s1353_s1 + $0x120] sm:$0xff] %v519_v36  ;;  %524 = vst [vmem:[%s1353_s1 + $0x190] sm:$0xff] %v523_v38  ;;  %v525_v39 = vld [vmem:[%s1352_s0 + $0x330] sm:$0xff] }
  0x15   :  { %522 = vst [vmem:[%s1353_s1 + $0x2e0] sm:$0xff] %v521_v37  ;;  %v527_v40 = vld [vmem:[%s1352_s0 + $0x10] sm:$0xff]  ;;  %526 = vst [vmem:[%s1353_s1 + $0x350] sm:$0xff] %v525_v39  ;;  %v531_v42 = vld [vmem:[%s1352_s0 + $0x80] sm:$0xff] }
  0x16   :  { %v529_v41 = vld [vmem:[%s1352_s0 + $0x1d0] sm:$0xff]  ;;  %528 = vst [vmem:[%s1353_s1 + $0x50] sm:$0xff] %v527_v40  ;;  %v533_v43 = vld [vmem:[%s1352_s0 + $0x240] sm:$0xff]  ;;  %532 = vst [vmem:[%s1353_s1 + $0xc0] sm:$0xff] %v531_v42 }
  0x17   :  { %530 = vst [vmem:[%s1353_s1 + $0x210] sm:$0xff] %v529_v41  ;;  %v535_v44 = vld [vmem:[%s1352_s0 + $0xf0] sm:$0xff]  ;;  %534 = vst [vmem:[%s1353_s1 + $0x280] sm:$0xff] %v533_v43  ;;  %v539_v46 = vld [vmem:[%s1352_s0 + $0x160] sm:$0xff] }
  0x18   :  { %536 = vst [vmem:[%s1353_s1 + $0x130] sm:$0xff] %v535_v44  ;;  %v537_v45 = vld [vmem:[%s1352_s0 + $0x2b0] sm:$0xff]  ;;  %v541_v47 = vld [vmem:[%s1352_s0 + $0x320] sm:$0xff]  ;;  %540 = vst [vmem:[%s1353_s1 + $0x1a0] sm:$0xff] %v539_v46 }
  0x19   :  { %538 = vst [vmem:[%s1353_s1 + $0x2f0] sm:$0xff] %v537_v45  ;;  %542 = vst [vmem:[%s1353_s1 + $0x360] sm:$0xff] %v541_v47  ;;  %v193_v48 = vld [vmem:[%s1352_s0] sm:$0xff]  ;;  %v546_v50 = vld [vmem:[%s1352_s0 + $0x70] sm:$0xff] }
  0x1a   :  { %v544_v49 = vld [vmem:[%s1352_s0 + $0x1c0] sm:$0xff]  ;;  %543 = vst [vmem:[%s1353_s1 + $0x60] sm:$0xff] %v193_v48  ;;  %547 = vst [vmem:[%s1353_s1 + $0xd0] sm:$0xff] %v546_v50  ;;  %v548_v51 = vld [vmem:[%s1352_s0 + $0x230] sm:$0xff] }
  0x1b   :  { %545 = vst [vmem:[%s1353_s1 + $0x220] sm:$0xff] %v544_v49  ;;  %v550_v52 = vld [vmem:[%s1352_s0 + $0xe0] sm:$0xff]  ;;  %549 = vst [vmem:[%s1353_s1 + $0x290] sm:$0xff] %v548_v51  ;;  %v554_v54 = vld [vmem:[%s1352_s0 + $0x150] sm:$0xff] }
  0x1c   :  { %v552_v53 = vld [vmem:[%s1352_s0 + $0x2a0] sm:$0xff]  ;;  %551 = vst [vmem:[%s1353_s1 + $0x140] sm:$0xff] %v550_v52  ;;  %v556_v55 = vld [vmem:[%s1352_s0 + $0x310] sm:$0xff]  ;;  %555 = vst [vmem:[%s1353_s1 + $0x1b0] sm:$0xff] %v554_v54 }
  0x1d   :  { %553 = vst [vmem:[%s1353_s1 + $0x300] sm:$0xff] %v552_v53  ;;  %557 = vst [vmem:[%s1353_s1 + $0x370] sm:$0xff] %v556_v55  ;;  %v560_v57 = vld [vmem:[%s1352_s0 + $0x228] sm:$0xff]  ;;  %v562_v58 = vld [vmem:[%s1352_s0 + $0xd8] sm:$0xff] }
  0x1e   :  { %559 = vst [vmem:[%s1353_s1 + $0x8] sm:$0xff] %v558_v56  ;;  %v564_v59 = vld [vmem:[%s1352_s0 + $0x298] sm:$0xff]  ;;  %561 = vst [vmem:[%s1353_s1 + $0x1c8] sm:$0xff] %v560_v57  ;;  %v566_v60 = vld [vmem:[%s1352_s0 + $0x148] sm:$0xff] }
  0x1f   :  { %563 = vst [vmem:[%s1353_s1 + $0x78] sm:$0xff] %v562_v58  ;;  %565 = vst [vmem:[%s1353_s1 + $0x238] sm:$0xff] %v564_v59  ;;  %v568_v61 = vld [vmem:[%s1352_s0 + $0x308] sm:$0xff]  ;;  %v570_v62 = vld [vmem:[%s1352_s0 + $0x1b8] sm:$0xff] }
  0x20   :  { %567 = vst [vmem:[%s1353_s1 + $0xe8] sm:$0xff] %v566_v60  ;;  %569 = vst [vmem:[%s1353_s1 + $0x2a8] sm:$0xff] %v568_v61  ;;  %v572_v63 = vld [vmem:[%s1352_s0 + $0x378] sm:$0xff]  ;;  %v578_v2 = vld [vmem:[%s1352_s0 + $0xc8] sm:$0xff] }
  0x21   :  { %571 = vst [vmem:[%s1353_s1 + $0x158] sm:$0xff] %v570_v62  ;;  %v574_v0 = vld [vmem:[%s1352_s0 + $0x58] sm:$0xff]  ;;  %573 = vst [vmem:[%s1353_s1 + $0x318] sm:$0xff] %v572_v63  ;;  %v580_v3 = vld [vmem:[%s1352_s0 + $0x288] sm:$0xff] }
  0x22   :  { %v576_v1 = vld [vmem:[%s1352_s0 + $0x218] sm:$0xff]  ;;  %575 = vst [vmem:[%s1353_s1 + $0x18] sm:$0xff] %v574_v0  ;;  %579 = vst [vmem:[%s1353_s1 + $0x88] sm:$0xff] %v578_v2  ;;  %v586_v6 = vld [vmem:[%s1352_s0 + $0x1a8] sm:$0xff] }
  0x23   :  { %577 = vst [vmem:[%s1353_s1 + $0x1d8] sm:$0xff] %v576_v1  ;;  %v582_v4 = vld [vmem:[%s1352_s0 + $0x138] sm:$0xff]  ;;  %581 = vst [vmem:[%s1353_s1 + $0x248] sm:$0xff] %v580_v3  ;;  %v588_v7 = vld [vmem:[%s1352_s0 + $0x368] sm:$0xff] }
  0x24   :  { %583 = vst [vmem:[%s1353_s1 + $0xf8] sm:$0xff] %v582_v4  ;;  %v584_v5 = vld [vmem:[%s1352_s0 + $0x2f8] sm:$0xff]  ;;  %587 = vst [vmem:[%s1353_s1 + $0x168] sm:$0xff] %v586_v6  ;;  %v590_v8 = vld [vmem:[%s1352_s0 + $0x48] sm:$0xff] }
  0x25   :  { %585 = vst [vmem:[%s1353_s1 + $0x2b8] sm:$0xff] %v584_v5  ;;  %589 = vst [vmem:[%s1353_s1 + $0x328] sm:$0xff] %v588_v7  ;;  %v592_v9 = vld [vmem:[%s1352_s0 + $0x208] sm:$0xff]  ;;  %v594_v10 = vld [vmem:[%s1352_s0 + $0xb8] sm:$0xff] }
  0x26   :  { %591 = vst [vmem:[%s1353_s1 + $0x28] sm:$0xff] %v590_v8  ;;  %593 = vst [vmem:[%s1353_s1 + $0x1e8] sm:$0xff] %v592_v9  ;;  %v596_v11 = vld [vmem:[%s1352_s0 + $0x278] sm:$0xff]  ;;  %v598_v12 = vld [vmem:[%s1352_s0 + $0x128] sm:$0xff] }
  0x27   :  { %595 = vst [vmem:[%s1353_s1 + $0x98] sm:$0xff] %v594_v10  ;;  %v600_v13 = vld [vmem:[%s1352_s0 + $0x2e8] sm:$0xff]  ;;  %597 = vst [vmem:[%s1353_s1 + $0x258] sm:$0xff] %v596_v11  ;;  %v602_v14 = vld [vmem:[%s1352_s0 + $0x198] sm:$0xff] }
  0x28   :  { %599 = vst [vmem:[%s1353_s1 + $0x108] sm:$0xff] %v598_v12  ;;  %601 = vst [vmem:[%s1353_s1 + $0x2c8] sm:$0xff] %v600_v13  ;;  %v604_v15 = vld [vmem:[%s1352_s0 + $0x358] sm:$0xff]  ;;  %v610_v18 = vld [vmem:[%s1352_s0 + $0xa8] sm:$0xff] }
  0x29   :  { %v606_v16 = vld [vmem:[%s1352_s0 + $0x38] sm:$0xff]  ;;  %603 = vst [vmem:[%s1353_s1 + $0x178] sm:$0xff] %v602_v14  ;;  %605 = vst [vmem:[%s1353_s1 + $0x338] sm:$0xff] %v604_v15  ;;  %v612_v19 = vld [vmem:[%s1352_s0 + $0x268] sm:$0xff] }
  0x2a   :  { %607 = vst [vmem:[%s1353_s1 + $0x38] sm:$0xff] %v606_v16  ;;  %v608_v17 = vld [vmem:[%s1352_s0 + $0x1f8] sm:$0xff]  ;;  %611 = vst [vmem:[%s1353_s1 + $0xa8] sm:$0xff] %v610_v18  ;;  %v618_v22 = vld [vmem:[%s1352_s0 + $0x188] sm:$0xff] }
  0x2b   :  { %609 = vst [vmem:[%s1353_s1 + $0x1f8] sm:$0xff] %v608_v17  ;;  %613 = vst [vmem:[%s1353_s1 + $0x268] sm:$0xff] %v612_v19  ;;  %v614_v20 = vld [vmem:[%s1352_s0 + $0x118] sm:$0xff]  ;;  %v620_v23 = vld [vmem:[%s1352_s0 + $0x348] sm:$0xff] }
  0x2c   :  { %v616_v21 = vld [vmem:[%s1352_s0 + $0x2d8] sm:$0xff]  ;;  %615 = vst [vmem:[%s1353_s1 + $0x118] sm:$0xff] %v614_v20  ;;  %619 = vst [vmem:[%s1353_s1 + $0x188] sm:$0xff] %v618_v22  ;;  %v622_v24 = vld [vmem:[%s1352_s0 + $0x28] sm:$0xff] }
  0x2d   :  { %617 = vst [vmem:[%s1353_s1 + $0x2d8] sm:$0xff] %v616_v21  ;;  %v624_v25 = vld [vmem:[%s1352_s0 + $0x1e8] sm:$0xff]  ;;  %621 = vst [vmem:[%s1353_s1 + $0x348] sm:$0xff] %v620_v23  ;;  %v626_v26 = vld [vmem:[%s1352_s0 + $0x98] sm:$0xff] }
  0x2e   :  { %623 = vst [vmem:[%s1353_s1 + $0x48] sm:$0xff] %v622_v24  ;;  %625 = vst [vmem:[%s1353_s1 + $0x208] sm:$0xff] %v624_v25  ;;  %v628_v27 = vld [vmem:[%s1352_s0 + $0x258] sm:$0xff]  ;;  %v630_v28 = vld [vmem:[%s1352_s0 + $0x108] sm:$0xff] }
  0x2f   :  { %627 = vst [vmem:[%s1353_s1 + $0xb8] sm:$0xff] %v626_v26  ;;  %629 = vst [vmem:[%s1353_s1 + $0x278] sm:$0xff] %v628_v27  ;;  %v632_v29 = vld [vmem:[%s1352_s0 + $0x2c8] sm:$0xff]  ;;  %v634_v30 = vld [vmem:[%s1352_s0 + $0x178] sm:$0xff] }
  0x30   :  { %631 = vst [vmem:[%s1353_s1 + $0x128] sm:$0xff] %v630_v28  ;;  %v636_v31 = vld [vmem:[%s1352_s0 + $0x338] sm:$0xff]  ;;  %633 = vst [vmem:[%s1353_s1 + $0x2e8] sm:$0xff] %v632_v29  ;;  %v642_v34 = vld [vmem:[%s1352_s0 + $0x88] sm:$0xff] }
  0x31   :  { %635 = vst [vmem:[%s1353_s1 + $0x198] sm:$0xff] %v634_v30  ;;  %637 = vst [vmem:[%s1353_s1 + $0x358] sm:$0xff] %v636_v31  ;;  %v638_v32 = vld [vmem:[%s1352_s0 + $0x18] sm:$0xff]  ;;  %v644_v35 = vld [vmem:[%s1352_s0 + $0x248] sm:$0xff] }
  0x32   :  { %v640_v33 = vld [vmem:[%s1352_s0 + $0x1d8] sm:$0xff]  ;;  %639 = vst [vmem:[%s1353_s1 + $0x58] sm:$0xff] %v638_v32  ;;  %643 = vst [vmem:[%s1353_s1 + $0xc8] sm:$0xff] %v642_v34  ;;  %v650_v38 = vld [vmem:[%s1352_s0 + $0x168] sm:$0xff] }
  0x33   :  { %641 = vst [vmem:[%s1353_s1 + $0x218] sm:$0xff] %v640_v33  ;;  %v646_v36 = vld [vmem:[%s1352_s0 + $0xf8] sm:$0xff]  ;;  %645 = vst [vmem:[%s1353_s1 + $0x288] sm:$0xff] %v644_v35  ;;  %v652_v39 = vld [vmem:[%s1352_s0 + $0x328] sm:$0xff] }
  0x34   :  { %v648_v37 = vld [vmem:[%s1352_s0 + $0x2b8] sm:$0xff]  ;;  %647 = vst [vmem:[%s1353_s1 + $0x138] sm:$0xff] %v646_v36  ;;  %v654_v40 = vld [vmem:[%s1352_s0 + $0x8] sm:$0xff]  ;;  %651 = vst [vmem:[%s1353_s1 + $0x1a8] sm:$0xff] %v650_v38 }
  0x35   :  { %649 = vst [vmem:[%s1353_s1 + $0x2f8] sm:$0xff] %v648_v37  ;;  %653 = vst [vmem:[%s1353_s1 + $0x368] sm:$0xff] %v652_v39  ;;  %v656_v41 = vld [vmem:[%s1352_s0 + $0x1c8] sm:$0xff]  ;;  %v658_v42 = vld [vmem:[%s1352_s0 + $0x78] sm:$0xff] }
  0x36   :  { %655 = vst [vmem:[%s1353_s1 + $0x68] sm:$0xff] %v654_v40  ;;  %v660_v43 = vld [vmem:[%s1352_s0 + $0x238] sm:$0xff]  ;;  %657 = vst [vmem:[%s1353_s1 + $0x228] sm:$0xff] %v656_v41  ;;  %v662_v44 = vld [vmem:[%s1352_s0 + $0xe8] sm:$0xff] }
  0x37   :  { %659 = vst [vmem:[%s1353_s1 + $0xd8] sm:$0xff] %v658_v42  ;;  %661 = vst [vmem:[%s1353_s1 + $0x298] sm:$0xff] %v660_v43  ;;  %v664_v45 = vld [vmem:[%s1352_s0 + $0x2a8] sm:$0xff]  ;;  %v666_v46 = vld [vmem:[%s1352_s0 + $0x158] sm:$0xff] }
  0x38   :  { %663 = vst [vmem:[%s1353_s1 + $0x148] sm:$0xff] %v662_v44  ;;  %665 = vst [vmem:[%s1353_s1 + $0x308] sm:$0xff] %v664_v45  ;;  %v668_v47 = vld [vmem:[%s1352_s0 + $0x318] sm:$0xff] }
  0x39   :  { %667 = vst [vmem:[%s1353_s1 + $0x1b8] sm:$0xff] %v666_v46  ;;  %669 = vst [vmem:[%s1353_s1 + $0x378] sm:$0xff] %v668_v47 }

</bundles_post_ra>
